<compile_context>
chip_gen: v5e
topology: v5e:2x2
jax: 0.10.0
libtpu: 0.0.40
codegen_flags: <defaults>
</compile_context>

<pallas_src>
import functools

import jax
import jax.numpy as jnp
from jax.experimental import pallas as pl
from jax.experimental.pallas import tpu as pltpu


# -----------------------------------------------------------------------------
# Fused Pallas kernel: the entire Discriminator forward in one call.
# -----------------------------------------------------------------------------
def _fused_disc_kernel(img_ref, mom_ref, pt_ref, w_ref, b_ref, o_ref, *,
                       slope, layout):
    """o = fc1(conv_tower(img) * emb(mom, pt)); const/bias pre-folded.

    All weights live in one packed VMEM slab (`w_ref`), all biases in another
    (`b_ref`); `layout` holds the static (row_offset, k, n, bias_row) tuples,
    so every slice below is a zero-cost static view into VMEM.
    """

    def leaky(y):
        return jnp.where(y >= 0.0, y, slope * y)

    def w_at(r0, k, n):                       # static slice: (k, n) weight
        return w_ref[r0:r0 + k, 0:n]

    def b_at(row, n):                         # static slice: (1, n) bias
        return b_ref[row:row + 1, 0:n]

    # --- conv tower: im2col + bias + (*const) folded into dense weights ------
    x = img_ref[...]                          # (B, H*W*Cin) f32
    for r0, k, n, brow in layout["conv"]:     # trace-time unroll (5 layers)
        x = leaky(jnp.dot(x, w_at(r0, k, n),
                          preferred_element_type=jnp.float32) + b_at(brow, n))
    # final conv output is 1x1 spatial, so x == PyTorch Flatten(img): (B, emb)

    # --- emb = emb1(LeakyReLU(emb0(cat(mom, pt)) * const)) * const -----------
    # (emb0 weight split into momentum/point halves; no in-kernel concat)
    mr0, mk, mn = layout["emb0m"]
    pr0, pk, pn = layout["emb0p"]
    h = (jnp.dot(mom_ref[...], w_at(mr0, mk, mn),
                 preferred_element_type=jnp.float32)
         + jnp.dot(pt_ref[...], w_at(pr0, pk, pn),
                   preferred_element_type=jnp.float32)
         + b_at(layout["emb0_brow"], mn))
    h = leaky(h)
    er0, ek, en, ebrow = layout["emb1"]
    emb = (jnp.dot(h, w_at(er0, ek, en), preferred_element_type=jnp.float32)
           + b_at(ebrow, en))

    # --- head: fc1(img * emb) * const, N == 1 -> VPU multiply + lane reduce --
    fr0, fn, fbrow = layout["fc1"]
    fw = w_ref[fr0:fr0 + 1, 0:fn]             # (1, emb) fc1 weight row
    prod = x * emb * fw                       # (B, emb)
    o_ref[...] = (jnp.sum(prod, axis=-1, keepdims=True)
                  + b_ref[fbrow:fbrow + 1, 0:1])


def discriminator_forward(layout, wslab, bslab, img_nchw, momentum, point):
    """Runs the whole Discriminator forward as a single fused Pallas kernel.

    `layout` is a plain-Python (static) dict of slice offsets; `wslab`/`bslab`
    are the packed weight/bias slabs produced once by `pack_folded`.
    """
    B = img_nchw.shape[0]
    # Cin == 1, so NCHW-flat == NHWC-flat: plain reshape, no transpose op.
    img_flat = img_nchw.reshape(B, -1)
    if img_flat.dtype != jnp.float32:
        img_flat = img_flat.astype(jnp.float32)
    if momentum.dtype != jnp.float32:
        momentum = momentum.astype(jnp.float32)
    if point.dtype != jnp.float32:
        point = point.astype(jnp.float32)

    operands = [img_flat, momentum, point, wslab, bslab]   # 5 DMAs total

    # Advisory cost estimate so XLA schedules around the custom call sensibly.
    flops = 0
    for _, k, n, _ in layout["conv"]:
        flops += 2 * B * k * n
    flops += 2 * B * layout["emb0m"][1] * layout["emb0m"][2]
    flops += 2 * B * layout["emb0p"][1] * layout["emb0p"][2]
    flops += 2 * B * layout["emb1"][1] * layout["emb1"][2]
    flops += 4 * B * layout["fc1"][1]                      # head mul + reduce
    bytes_accessed = sum(int(o.size) * 4 for o in operands) + B * 4

    vmem_spec = pl.BlockSpec(memory_space=pltpu.MemorySpace.VMEM)
    kernel = functools.partial(_fused_disc_kernel, slope=0.01, layout=layout)

    return pl.pallas_call(
        kernel,
        out_shape=jax.ShapeDtypeStruct((B, 1), jnp.float32),
        in_specs=[vmem_spec] * len(operands),
        out_specs=vmem_spec,
        cost_estimate=pl.CostEstimate(flops=int(flops), transcendentals=0,
                                      bytes_accessed=int(bytes_accessed)),
    )(*operands)


# -----------------------------------------------------------------------------
# Plain-JAX glue (one-time, input-independent parameter setup / folding)
# -----------------------------------------------------------------------------
def spectral_normalize(w):
    """Divide weight by its exact largest singular value (viewed as (out,-1)).

    TODO(synk): PyTorch uses a stateful 1-step power iteration with a
    persistent `u` buffer; the exact sigma is used here instead.
    """
    wm = w.reshape(w.shape[0], -1)
    sigma = jnp.linalg.svd(wm, compute_uv=False)[0]
    return w / sigma


def init_params(key, cfg):
    """Raw parameters in PyTorch layout: Linear (out,in), Conv (O,I,kh,kw)."""
    ks = jax.random.split(key, 16)
    p = {}
    in0 = cfg["momentums_dim"] + cfg["points_dim"]
    p["emb0_w"] = spectral_normalize(
        0.1 * jax.random.normal(ks[0], (cfg["emb_dim"], in0), jnp.float32))
    p["emb0_b"] = 0.01 * jax.random.normal(ks[1], (cfg["emb_dim"],), jnp.float32)
    p["emb1_w"] = spectral_normalize(
        0.1 * jax.random.normal(ks[2], (cfg["emb_dim"], cfg["emb_dim"]),
                                jnp.float32))
    p["emb1_b"] = 0.01 * jax.random.normal(ks[3], (cfg["emb_dim"],), jnp.float32)
    chans = [1] + list(cfg["num_channels"])
    p["conv"] = []
    for i in range(5):
        w = 0.1 * jax.random.normal(
            ks[4 + 2 * i],
            (chans[i + 1], chans[i], cfg["kernel_size"], cfg["kernel_size"]),
            jnp.float32)
        w = spectral_normalize(w)
        b = 0.01 * jax.random.normal(ks[5 + 2 * i], (chans[i + 1],), jnp.float32)
        p["conv"].append((w, b))
    p["fc1_w"] = spectral_normalize(
        0.1 * jax.random.normal(ks[14], (1, cfg["emb_dim"]), jnp.float32))
    p["fc1_b"] = 0.01 * jax.random.normal(ks[15], (1,), jnp.float32)
    return p


def _conv_as_dense(w, b, h_in, w_in, stride, pad, const):
    """Fold one Conv2d (+bias, *const) into a dense matmul on NHWC-flat input.

    Returns (W_dense (Hin*Win*Cin, Ho*Wo*Cout), b_dense (1, Ho*Wo*Cout), Ho, Wo).
    Input-independent one-time transform (the actual image never touches this).
    """
    cout, cin, k, _ = w.shape
    n_in = h_in * w_in * cin
    basis = jnp.eye(n_in, dtype=jnp.float32).reshape(n_in, h_in, w_in, cin)
    resp = jax.lax.conv_general_dilated(
        basis, jnp.transpose(w, (2, 3, 1, 0)).astype(jnp.float32),   # HWIO
        window_strides=(stride, stride),
        padding=[(pad, pad), (pad, pad)],
        dimension_numbers=("NHWC", "HWIO", "NHWC"),
        precision=jax.lax.Precision.HIGHEST)
    h_out, w_out = int(resp.shape[1]), int(resp.shape[2])
    w_dense = resp.reshape(n_in, h_out * w_out * cout) * const
    b_dense = (jnp.tile(b, h_out * w_out) * const).reshape(1, -1)
    return (w_dense.astype(jnp.float32), b_dense.astype(jnp.float32),
            h_out, w_out)


def fold_params(params, cfg, const=1.0):
    """One-time folding: conv->dense matmul, `const` into weights/biases,
    emb0 split into momentum/point halves, biases reshaped to (1, N).

    (Folding `const` is exact because the reference applies it pre-activation:
    leaky((xW+b)*const) in both.)
    """
    folded = {"conv": []}
    h = w = cfg["image_size"]
    cin = 1
    for (wc, bc), s, p in zip(params["conv"], cfg["strides"], cfg["paddings"]):
        wd, bd, h, w = _conv_as_dense(wc, bc, h, w, s, p, const)
        folded["conv"].append((wd, bd))
        cin = wc.shape[0]
    assert h == 1 and w == 1 and cin == cfg["emb_dim"], (
        "final conv output must be (emb_dim, 1, 1) so img * emb is well defined")
    md = cfg["momentums_dim"]
    w0 = params["emb0_w"].T * const                          # (in0, emb)
    folded["emb0_wm"] = jnp.asarray(w0[:md], jnp.float32)
    folded["emb0_wp"] = jnp.asarray(w0[md:], jnp.float32)
    folded["emb0_b"] = (params["emb0_b"] * const).reshape(1, -1).astype(jnp.float32)
    folded["emb1_w"] = (params["emb1_w"].T * const).astype(jnp.float32)
    folded["emb1_b"] = (params["emb1_b"] * const).reshape(1, -1).astype(jnp.float32)
    folded["fc1_w"] = (params["fc1_w"] * const).astype(jnp.float32)   # (1, emb)
    folded["fc1_b"] = (params["fc1_b"] * const).reshape(1, 1).astype(jnp.float32)
    return folded


def pack_folded(folded):
    """One-time packing of all weights/biases into two DMA-friendly slabs.

    Weight slab: every weight padded to (ceil(k/8)*8, width) with width = max
    output dim rounded up to 128, stacked along rows (row starts 8-aligned).
    Bias slab: one (1, width) zero-padded row per layer (8 rows total),
    including the (1,1) fc1 bias.  Returns (wslab, bslab, layout) where
    `layout` holds plain-Python static slice offsets for the kernel.
    """
    def rup(n, m):
        return -(-n // m) * m

    wblocks = [w for w, _ in folded["conv"]] + [
        folded["emb0_wm"], folded["emb0_wp"], folded["emb1_w"], folded["fc1_w"]]
    width = rup(max(int(w.shape[1]) for w in wblocks), 128)

    offs, padded, r = [], [], 0
    for w in wblocks:
        k, n = int(w.shape[0]), int(w.shape[1])
        offs.append(r)
        kp = rup(k, 8)
        padded.append(jnp.pad(w.astype(jnp.float32),
                              ((0, kp - k), (0, width - n))))
        r += kp
    wslab = jnp.concatenate(padded, axis=0)                    # (744, 256) here

    biases = [b for _, b in folded["conv"]] + [
        folded["emb0_b"], folded["emb1_b"], folded["fc1_b"]]
    bslab = jnp.concatenate(
        [jnp.pad(b.astype(jnp.float32), ((0, 0), (0, width - int(b.shape[1]))))
         for b in biases], axis=0)                             # (8, 256) here

    layout = dict(
        conv=tuple(
            (offs[i], int(folded["conv"][i][0].shape[0]),
             int(folded["conv"][i][0].shape[1]), i)
            for i in range(5)),
        emb0m=(offs[5], int(folded["emb0_wm"].shape[0]),
               int(folded["emb0_wm"].shape[1])),
        emb0p=(offs[6], int(folded["emb0_wp"].shape[0]),
               int(folded["emb0_wp"].shape[1])),
        emb0_brow=5,
        emb1=(offs[7], int(folded["emb1_w"].shape[0]),
              int(folded["emb1_w"].shape[1]), 6),
        fc1=(offs[8], int(folded["fc1_w"].shape[1]), 7),
    )
    return wslab, bslab, layout


def reference_forward(params, img_nchw, momentum, point, cfg, const=1.0):
    """Plain-JAX reference of the PyTorch forward (numerics check only)."""
    hp = jax.lax.Precision.HIGHEST
    slope = 0.01
    x = img_nchw
    for (w, b), s, p in zip(params["conv"], cfg["strides"], cfg["paddings"]):
        x = jax.lax.conv_general_dilated(
            x, w, (s, s), [(p, p), (p, p)],
            dimension_numbers=("NCHW", "OIHW", "NCHW"), precision=hp)
        x = (x + b.reshape(1, -1, 1, 1)) * const
        x = jnp.where(x >= 0.0, x, slope * x)
    img_flat = x.reshape(x.shape[0], -1)
    mp = jnp.concatenate([momentum, point], axis=1)
    h = (jnp.dot(mp, params["emb0_w"].T, precision=hp) + params["emb0_b"]) * const
    h = jnp.where(h >= 0.0, h, slope * h)
    emb = (jnp.dot(h, params["emb1_w"].T, precision=hp) + params["emb1_b"]) * const
    res = (jnp.dot(img_flat * emb, params["fc1_w"].T, precision=hp)
           + params["fc1_b"]) * const
    return res


# -----------------------------------------------------------------------------
if __name__ == "__main__":
    cfg = dict(
        momentums_dim=4,
        points_dim=4,
        emb_dim=32,                  # equals final conv flatten size (32*1*1)
        num_channels=[4, 8, 8, 16, 32],
        kernel_size=3,
        strides=[2, 2, 2, 2, 1],
        paddings=[1, 1, 1, 1, 1],
        image_size=16,
    )
    key = jax.random.PRNGKey(0)
    k_img, k_mom, k_pt, k_par = jax.random.split(key, 4)

    img = jax.random.normal(k_img, (2, 1, 16, 16), jnp.float32)          # NCHW
    momentum = jax.random.normal(k_mom, (2, cfg["momentums_dim"]), jnp.float32)
    point = jax.random.normal(k_pt, (2, cfg["points_dim"]), jnp.float32)

    const = 1.0                                   # PyTorch module default
    params = init_params(k_par, cfg)
    folded = fold_params(params, cfg, const=const)
    wslab, bslab, layout = pack_folded(folded)    # one-time: 2 slabs + layout

    # `layout` (static python ints) is bound via partial so it never becomes a
    # traced jit argument; only the 5 arrays are jit inputs.
    fwd = jax.jit(functools.partial(discriminator_forward, layout))
    res = jax.block_until_ready(fwd(wslab, bslab, img, momentum, point))

    assert res.shape == (2, 1), res.shape
    assert bool(jnp.all(jnp.isfinite(res)))

    # Numerics check against a plain-JAX version of the PyTorch forward.
    # Tolerance 2e-2 is intentional: in-kernel dots use default MXU precision
    # (bf16-pass decomposition) across 8 chained matmuls.
    ref = reference_forward(params, img, momentum, point, cfg, const=const)
    assert jnp.allclose(res, ref, rtol=2e-2, atol=2e-2), (res, ref)

    print("KERNEL_OK")
</pallas_src>

<mosaic_0001>
module attributes {stable_mosaic.version = 11 : i64} {
  func.func @_fused_disc_kernel(%arg0: memref<2x256xf32, #tpu.memory_space<vmem>>, %arg1: memref<2x4xf32, #tpu.memory_space<vmem>>, %arg2: memref<2x4xf32, #tpu.memory_space<vmem>>, %arg3: memref<744x256xf32, #tpu.memory_space<vmem>>, %arg4: memref<8x256xf32, #tpu.memory_space<vmem>>, %arg5: memref<2x1xf32, #tpu.memory_space<vmem>>) attributes {dimension_semantics = [], scalar_prefetch = 0 : i64, scratch_operands = 0 : i64, tpu.core_type = #tpu.core_type<tc>} {
    %c0 = arith.constant 0 : index
    %c0_0 = arith.constant 0 : index
    %0 = vector.load %arg0[%c0, %c0_0] : memref<2x256xf32, #tpu.memory_space<vmem>>, vector<2x256xf32>
    %c0_1 = arith.constant 0 : index
    %c0_2 = arith.constant 0 : index
    %1 = vector.load %arg3[%c0_1, %c0_2] : memref<744x256xf32, #tpu.memory_space<vmem>>, vector<256x256xf32>
    %cst = arith.constant dense<0.000000e+00> : vector<2x256xf32>
    %2 = tpu.matmul %0, %1, %cst {dimension_numbers = #tpu.dot_dimension_numbers<[1], [0], [0], [1], [0, 0, 1, 1], [], []>} : vector<2x256xf32>, vector<256x256xf32>, vector<2x256xf32> -> vector<2x256xf32>
    %c0_3 = arith.constant 0 : index
    %c0_4 = arith.constant 0 : index
    %3 = vector.load %arg4[%c0_3, %c0_4] : memref<8x256xf32, #tpu.memory_space<vmem>>, vector<1x256xf32>
    %4 = vector.broadcast %3 : vector<1x256xf32> to vector<2x256xf32>
    %5 = arith.addf %2, %4 : vector<2x256xf32>
    %cst_5 = arith.constant 0.000000e+00 : f32
    %6 = vector.broadcast %cst_5 : f32 to vector<2x256xf32>
    %7 = arith.cmpf oge, %5, %6 : vector<2x256xf32>
    %cst_6 = arith.constant 0.00999999977 : f32
    %8 = vector.broadcast %cst_6 : f32 to vector<2x256xf32>
    %9 = arith.mulf %8, %5 : vector<2x256xf32>
    %10 = arith.select %7, %5, %9 : vector<2x256xi1>, vector<2x256xf32>
    %c256 = arith.constant 256 : index
    %c0_7 = arith.constant 0 : index
    %11 = vector.load %arg3[%c256, %c0_7] : memref<744x256xf32, #tpu.memory_space<vmem>>, vector<256x128xf32>
    %cst_8 = arith.constant dense<0.000000e+00> : vector<2x128xf32>
    %12 = tpu.matmul %10, %11, %cst_8 {dimension_numbers = #tpu.dot_dimension_numbers<[1], [0], [0], [1], [0, 0, 1, 1], [], []>} : vector<2x256xf32>, vector<256x128xf32>, vector<2x128xf32> -> vector<2x128xf32>
    %c1 = arith.constant 1 : index
    %c0_9 = arith.constant 0 : index
    %13 = vector.load %arg4[%c1, %c0_9] : memref<8x256xf32, #tpu.memory_space<vmem>>, vector<1x128xf32>
    %14 = vector.broadcast %13 : vector<1x128xf32> to vector<2x128xf32>
    %15 = arith.addf %12, %14 : vector<2x128xf32>
    %cst_10 = arith.constant 0.000000e+00 : f32
    %16 = vector.broadcast %cst_10 : f32 to vector<2x128xf32>
    %17 = arith.cmpf oge, %15, %16 : vector<2x128xf32>
    %cst_11 = arith.constant 0.00999999977 : f32
    %18 = vector.broadcast %cst_11 : f32 to vector<2x128xf32>
    %19 = arith.mulf %18, %15 : vector<2x128xf32>
    %20 = arith.select %17, %15, %19 : vector<2x128xi1>, vector<2x128xf32>
    %c512 = arith.constant 512 : index
    %c0_12 = arith.constant 0 : index
    %21 = vector.load %arg3[%c512, %c0_12] : memref<744x256xf32, #tpu.memory_space<vmem>>, vector<128x32xf32>
    %cst_13 = arith.constant dense<0.000000e+00> : vector<2x32xf32>
    %22 = tpu.matmul %20, %21, %cst_13 {dimension_numbers = #tpu.dot_dimension_numbers<[1], [0], [0], [1], [0, 0, 1, 1], [], []>} : vector<2x128xf32>, vector<128x32xf32>, vector<2x32xf32> -> vector<2x32xf32>
    %c2 = arith.constant 2 : index
    %c0_14 = arith.constant 0 : index
    %23 = vector.load %arg4[%c2, %c0_14] : memref<8x256xf32, #tpu.memory_space<vmem>>, vector<1x32xf32>
    %24 = vector.broadcast %23 : vector<1x32xf32> to vector<2x32xf32>
    %25 = arith.addf %22, %24 : vector<2x32xf32>
    %cst_15 = arith.constant 0.000000e+00 : f32
    %26 = vector.broadcast %cst_15 : f32 to vector<2x32xf32>
    %27 = arith.cmpf oge, %25, %26 : vector<2x32xf32>
    %cst_16 = arith.constant 0.00999999977 : f32
    %28 = vector.broadcast %cst_16 : f32 to vector<2x32xf32>
    %29 = arith.mulf %28, %25 : vector<2x32xf32>
    %30 = arith.select %27, %25, %29 : vector<2x32xi1>, vector<2x32xf32>
    %c640 = arith.constant 640 : index
    %c0_17 = arith.constant 0 : index
    %31 = vector.load %arg3[%c640, %c0_17] : memref<744x256xf32, #tpu.memory_space<vmem>>, vector<32x16xf32>
    %cst_18 = arith.constant dense<0.000000e+00> : vector<2x16xf32>
    %32 = tpu.matmul %30, %31, %cst_18 {dimension_numbers = #tpu.dot_dimension_numbers<[1], [0], [0], [1], [0, 0, 1, 1], [], []>} : vector<2x32xf32>, vector<32x16xf32>, vector<2x16xf32> -> vector<2x16xf32>
    %c3 = arith.constant 3 : index
    %c0_19 = arith.constant 0 : index
    %33 = vector.load %arg4[%c3, %c0_19] : memref<8x256xf32, #tpu.memory_space<vmem>>, vector<1x16xf32>
    %34 = vector.broadcast %33 : vector<1x16xf32> to vector<2x16xf32>
    %35 = arith.addf %32, %34 : vector<2x16xf32>
    %cst_20 = arith.constant 0.000000e+00 : f32
    %36 = vector.broadcast %cst_20 : f32 to vector<2x16xf32>
    %37 = arith.cmpf oge, %35, %36 : vector<2x16xf32>
    %cst_21 = arith.constant 0.00999999977 : f32
    %38 = vector.broadcast %cst_21 : f32 to vector<2x16xf32>
    %39 = arith.mulf %38, %35 : vector<2x16xf32>
    %40 = arith.select %37, %35, %39 : vector<2x16xi1>, vector<2x16xf32>
    %c672 = arith.constant 672 : index
    %c0_22 = arith.constant 0 : index
    %41 = vector.load %arg3[%c672, %c0_22] : memref<744x256xf32, #tpu.memory_space<vmem>>, vector<16x32xf32>
    %cst_23 = arith.constant dense<0.000000e+00> : vector<2x32xf32>
    %42 = tpu.matmul %40, %41, %cst_23 {dimension_numbers = #tpu.dot_dimension_numbers<[1], [0], [0], [1], [0, 0, 1, 1], [], []>} : vector<2x16xf32>, vector<16x32xf32>, vector<2x32xf32> -> vector<2x32xf32>
    %c4 = arith.constant 4 : index
    %c0_24 = arith.constant 0 : index
    %43 = vector.load %arg4[%c4, %c0_24] : memref<8x256xf32, #tpu.memory_space<vmem>>, vector<1x32xf32>
    %44 = vector.broadcast %43 : vector<1x32xf32> to vector<2x32xf32>
    %45 = arith.addf %42, %44 : vector<2x32xf32>
    %cst_25 = arith.constant 0.000000e+00 : f32
    %46 = vector.broadcast %cst_25 : f32 to vector<2x32xf32>
    %47 = arith.cmpf oge, %45, %46 : vector<2x32xf32>
    %cst_26 = arith.constant 0.00999999977 : f32
    %48 = vector.broadcast %cst_26 : f32 to vector<2x32xf32>
    %49 = arith.mulf %48, %45 : vector<2x32xf32>
    %50 = arith.select %47, %45, %49 : vector<2x32xi1>, vector<2x32xf32>
    %c0_27 = arith.constant 0 : index
    %c0_28 = arith.constant 0 : index
    %51 = vector.load %arg1[%c0_27, %c0_28] : memref<2x4xf32, #tpu.memory_space<vmem>>, vector<2x4xf32>
    %c688 = arith.constant 688 : index
    %c0_29 = arith.constant 0 : index
    %52 = vector.load %arg3[%c688, %c0_29] : memref<744x256xf32, #tpu.memory_space<vmem>>, vector<4x32xf32>
    %cst_30 = arith.constant dense<0.000000e+00> : vector<2x32xf32>
    %53 = tpu.matmul %51, %52, %cst_30 {dimension_numbers = #tpu.dot_dimension_numbers<[1], [0], [0], [1], [0, 0, 1, 1], [], []>} : vector<2x4xf32>, vector<4x32xf32>, vector<2x32xf32> -> vector<2x32xf32>
    %c0_31 = arith.constant 0 : index
    %c0_32 = arith.constant 0 : index
    %54 = vector.load %arg2[%c0_31, %c0_32] : memref<2x4xf32, #tpu.memory_space<vmem>>, vector<2x4xf32>
    %c696 = arith.constant 696 : index
    %c0_33 = arith.constant 0 : index
    %55 = vector.load %arg3[%c696, %c0_33] : memref<744x256xf32, #tpu.memory_space<vmem>>, vector<4x32xf32>
    %cst_34 = arith.constant dense<0.000000e+00> : vector<2x32xf32>
    %56 = tpu.matmul %54, %55, %cst_34 {dimension_numbers = #tpu.dot_dimension_numbers<[1], [0], [0], [1], [0, 0, 1, 1], [], []>} : vector<2x4xf32>, vector<4x32xf32>, vector<2x32xf32> -> vector<2x32xf32>
    %57 = arith.addf %53, %56 : vector<2x32xf32>
    %c5 = arith.constant 5 : index
    %c0_35 = arith.constant 0 : index
    %58 = vector.load %arg4[%c5, %c0_35] : memref<8x256xf32, #tpu.memory_space<vmem>>, vector<1x32xf32>
    %59 = vector.broadcast %58 : vector<1x32xf32> to vector<2x32xf32>
    %60 = arith.addf %57, %59 : vector<2x32xf32>
    %cst_36 = arith.constant 0.000000e+00 : f32
    %61 = vector.broadcast %cst_36 : f32 to vector<2x32xf32>
    %62 = arith.cmpf oge, %60, %61 : vector<2x32xf32>
    %cst_37 = arith.constant 0.00999999977 : f32
    %63 = vector.broadcast %cst_37 : f32 to vector<2x32xf32>
    %64 = arith.mulf %63, %60 : vector<2x32xf32>
    %65 = arith.select %62, %60, %64 : vector<2x32xi1>, vector<2x32xf32>
    %c704 = arith.constant 704 : index
    %c0_38 = arith.constant 0 : index
    %66 = vector.load %arg3[%c704, %c0_38] : memref<744x256xf32, #tpu.memory_space<vmem>>, vector<32x32xf32>
    %cst_39 = arith.constant dense<0.000000e+00> : vector<2x32xf32>
    %67 = tpu.matmul %65, %66, %cst_39 {dimension_numbers = #tpu.dot_dimension_numbers<[1], [0], [0], [1], [0, 0, 1, 1], [], []>} : vector<2x32xf32>, vector<32x32xf32>, vector<2x32xf32> -> vector<2x32xf32>
    %c6 = arith.constant 6 : index
    %c0_40 = arith.constant 0 : index
    %68 = vector.load %arg4[%c6, %c0_40] : memref<8x256xf32, #tpu.memory_space<vmem>>, vector<1x32xf32>
    %69 = vector.broadcast %68 : vector<1x32xf32> to vector<2x32xf32>
    %70 = arith.addf %67, %69 : vector<2x32xf32>
    %c736 = arith.constant 736 : index
    %c0_41 = arith.constant 0 : index
    %71 = vector.load %arg3[%c736, %c0_41] : memref<744x256xf32, #tpu.memory_space<vmem>>, vector<1x32xf32>
    %72 = arith.mulf %50, %70 : vector<2x32xf32>
    %73 = vector.broadcast %71 : vector<1x32xf32> to vector<2x32xf32>
    %74 = arith.mulf %72, %73 : vector<2x32xf32>
    %cst_42 = arith.constant dense<0.000000e+00> : vector<2xf32>
    %75 = vector.multi_reduction <add>, %74, %cst_42 [1] : vector<2x32xf32> to vector<2xf32>
    %76 = vector.shape_cast %75 : vector<2xf32> to vector<2x1xf32>
    %c7 = arith.constant 7 : index
    %c0_43 = arith.constant 0 : index
    %77 = vector.load %arg4[%c7, %c0_43] : memref<8x256xf32, #tpu.memory_space<vmem>>, vector<1x1xf32>
    %78 = vector.broadcast %77 : vector<1x1xf32> to vector<2x1xf32>
    %79 = arith.addf %76, %78 : vector<2x1xf32>
    %c0_44 = arith.constant 0 : index
    %c0_45 = arith.constant 0 : index
    %80 = vector.load %arg5[%c0_44, %c0_45] : memref<2x1xf32, #tpu.memory_space<vmem>>, vector<2x1xf32>
    tpu.vector_store %arg5[%c0_44, %c0_45], %79 {strides = array<i32>} : memref<2x1xf32, #tpu.memory_space<vmem>>, vector<2x1xf32>,
    return
  }
}

</mosaic_0001>

<bundles_post_ra>
// kernel: discriminator_forward.1
= control target key start
LH: loop header
LB: loop body
LE: loop exit
PB: predicated region body
PF: predicated region fallthrough
CT: control target
= control target key end

     0   :  { %10 = vsyncpa [#allocation3], 0  ;;  %s520_s21 = smov [#allocation2]   ;;  %s521_s23 = smov 256   ;;  %s594_s0 = inlined_call_operand.vmem [shape: f32[2,256], index: 0, kind: input, shape index: {}]   ;;  %s595_s1 = inlined_call_operand.vmem [shape: f32[2,4], index: 1, kind: input, shape index: {}]   ;;  %s596_s2 = inlined_call_operand.vmem [shape: f32[2,4], index: 2, kind: input, shape index: {}]   ;;  %s597_s3 = inlined_call_operand.hbm [shape: f32[744,256], index: 3, kind: input, shape index: {}]   ;;  %s598_s4 = inlined_call_operand.vmem [shape: f32[8,256], index: 4, kind: input, shape index: {}]   ;;  %s599_s5 = inlined_call_operand.vmem [shape: f32[2,1], index: 5, kind: output, shape index: {}]  }
   0x1   :  { %s21_s20 = sshll.u32 %s597_s3, 4  ;;  %s23_s22 = sshll.u32 %s520_s21, 4  ;;  %s22_s20 = int_to_ptr.hbm [resolvable:$true] %s21_s20  ;;  %s24_s22 = int_to_ptr.vmem [resolvable:$true] %s23_s22 }
   0x2   :  { %s522_s24 = smov 16  }
   0x3   :  { %29 = dma.hbm_to_vmem [thread:$0]  %s22_s20, 23808, %s24_s22, [#allocation3], %s521_s23, %s521_s23, %s522_s24  }
   0x4   :  { %518 = dma.done.wait [#allocation3], 23808  }
   0x5   :  { %519 = vsyncadd [#allocation3], 4294943488  ;;  %v68_v0 = vld [vmem:[#allocation2 + $0xf8] sm:$0xff]  ;;  %v67_v1 = vld [vmem:[#allocation2 + $0xf0] sm:$0xff]  ;;  %vm320_vm4 = vcmask 261120   ;;  %vm385_vm5 = vcmask 1043456  }
   0x6   :  { %v66_v2 = vld [vmem:[#allocation2 + $0xe8] sm:$0xff]  ;;  %153 = vmatpush.msra.mxu2 %v68_v0  ;;  %113 = vmatpush.msra.mxu0 %v67_v1  ;;  %v100_v3 = vld [vmem:[#allocation2 + $0x1f8] sm:$0xff]  ;;  %v65_v4 = vld [vmem:[#allocation2 + $0xe0] sm:$0xff]  ;;  %vm350_vm7 = vcmask 130048   ;;  %vm381_vm8 = vcmask 31744   ;;  %vm471_vm11 = vcmask 254976  }
   0x7   :  { %v99_v5 = vld [vmem:[#allocation2 + $0x1f0] sm:$0xff]  ;;  %173 = vmatpush.msra.mxu3 %v100_v3  ;;  %v64_v6 = vld [vmem:[#allocation2 + $0xd8] sm:$0xff]  ;;  %v98_v7 = vld [vmem:[#allocation2 + $0x1e8] sm:$0xff]  ;;  %vm477_vm12 = vcmask 1024  }
   0x8   :  { %133 = vmatpush.msra.mxu1 %v99_v5  ;;  %v63_v8 = vld [vmem:[#allocation2 + $0xd0] sm:$0xff]  ;;  %154 = vmatpush.msra.mxu2 %v66_v2  ;;  %v97_v9 = vld [vmem:[#allocation2 + $0x1e0] sm:$0xff]  ;;  %v96_v10 = vld [vmem:[#allocation2 + $0x1d8] sm:$0xff] }
   0x9   :  { %114 = vmatpush.msra.mxu0 %v65_v4  ;;  %174 = vmatpush.msra.mxu3 %v98_v7  ;;  %v62_v11 = vld [vmem:[#allocation2 + $0xc8] sm:$0xff]  ;;  %v61_v12 = vld [vmem:[#allocation2 + $0xc0] sm:$0xff]  ;;  %v95_v13 = vld [vmem:[#allocation2 + $0x1d0] sm:$0xff] }
   0xa   :  { %134 = vmatpush.msra.mxu1 %v97_v9  ;;  %155 = vmatpush.msra.mxu2 %v64_v6  ;;  %v94_v14 = vld [vmem:[#allocation2 + $0x1c8] sm:$0xff]  ;;  %v93_v15 = vld [vmem:[#allocation2 + $0x1c0] sm:$0xff]  ;;  %v60_v16 = vld [vmem:[#allocation2 + $0xb8] sm:$0xff] }
   0xb   :  { %115 = vmatpush.msra.mxu0 %v63_v8  ;;  %175 = vmatpush.msra.mxu3 %v96_v10  ;;  %v59_v17 = vld [vmem:[#allocation2 + $0xb0] sm:$0xff]  ;;  %v92_v18 = vld [vmem:[#allocation2 + $0x1b8] sm:$0xff]  ;;  %v58_v20 = vld [vmem:[#allocation2 + $0xa8] sm:$0xff] }
   0xc   :  { %135 = vmatpush.msra.mxu1 %v95_v13  ;;  %156 = vmatpush.msra.mxu2 %v62_v11  ;;  %v91_v19 = vld [vmem:[#allocation2 + $0x1b0] sm:$0xff]  ;;  %v57_v21 = vld [vmem:[#allocation2 + $0xa0] sm:$0xff]  ;;  %v90_v22 = vld [vmem:[#allocation2 + $0x1a8] sm:$0xff] }
   0xd   :  { %116 = vmatpush.msra.mxu0 %v61_v12  ;;  %176 = vmatpush.msra.mxu3 %v94_v14  ;;  %v89_v23 = vld [vmem:[#allocation2 + $0x1a0] sm:$0xff]  ;;  %v56_v24 = vld [vmem:[#allocation2 + $0x98] sm:$0xff]  ;;  %v55_v25 = vld [vmem:[#allocation2 + $0x90] sm:$0xff] }
   0xe   :  { %136 = vmatpush.msra.mxu1 %v93_v15  ;;  %157 = vmatpush.msra.mxu2 %v60_v16  ;;  %v88_v26 = vld [vmem:[#allocation2 + $0x198] sm:$0xff]  ;;  %v87_v27 = vld [vmem:[#allocation2 + $0x190] sm:$0xff]  ;;  %v54_v28 = vld [vmem:[#allocation2 + $0x88] sm:$0xff] }
   0xf   :  { %117 = vmatpush.msra.mxu0 %v59_v17  ;;  %177 = vmatpush.msra.mxu3 %v92_v18  ;;  %v53_v29 = vld [vmem:[#allocation2 + $0x80] sm:$0xff]  ;;  %v86_v30 = vld [vmem:[#allocation2 + $0x188] sm:$0xff]  ;;  %v52_v32 = vld [vmem:[#allocation2 + $0x78] sm:$0xff] }
  0x10   :  { %137 = vmatpush.msra.mxu1 %v91_v19  ;;  %158 = vmatpush.msra.mxu2 %v58_v20  ;;  %v85_v31 = vld [vmem:[#allocation2 + $0x180] sm:$0xff]  ;;  %v51_v33 = vld [vmem:[#allocation2 + $0x70] sm:$0xff]  ;;  %v84_v34 = vld [vmem:[#allocation2 + $0x178] sm:$0xff] }
  0x11   :  { %118 = vmatpush.msra.mxu0 %v57_v21  ;;  %178 = vmatpush.msra.mxu3 %v90_v22  ;;  %v83_v35 = vld [vmem:[#allocation2 + $0x170] sm:$0xff]  ;;  %v50_v36 = vld [vmem:[#allocation2 + $0x68] sm:$0xff]  ;;  %v49_v37 = vld [vmem:[#allocation2 + $0x60] sm:$0xff] }
  0x12   :  { %138 = vmatpush.msra.mxu1 %v89_v23  ;;  %159 = vmatpush.msra.mxu2 %v56_v24  ;;  %v82_v38 = vld [vmem:[#allocation2 + $0x168] sm:$0xff]  ;;  %v81_v39 = vld [vmem:[#allocation2 + $0x160] sm:$0xff]  ;;  %v48_v40 = vld [vmem:[#allocation2 + $0x58] sm:$0xff] }
  0x13   :  { %119 = vmatpush.msra.mxu0 %v55_v25  ;;  %179 = vmatpush.msra.mxu3 %v88_v26  ;;  %v47_v41 = vld [vmem:[#allocation2 + $0x50] sm:$0xff]  ;;  %v80_v42 = vld [vmem:[#allocation2 + $0x158] sm:$0xff]  ;;  %v46_v44 = vld [vmem:[#allocation2 + $0x48] sm:$0xff] }
  0x14   :  { %139 = vmatpush.msra.mxu1 %v87_v27  ;;  %160 = vmatpush.msra.mxu2 %v54_v28  ;;  %v79_v43 = vld [vmem:[#allocation2 + $0x150] sm:$0xff]  ;;  %v45_v45 = vld [vmem:[#allocation2 + $0x40] sm:$0xff]  ;;  %v36_v46 = vld [vmem:[%s594_s0] sm:$0xf] }
  0x15   :  { %120 = vmatpush.msra.mxu0 %v53_v29  ;;  %180 = vmatpush.msra.mxu3 %v86_v30  ;;  %v78_v47 = vld [vmem:[#allocation2 + $0x148] sm:$0xff]  ;;  %v77_v48 = vld [vmem:[#allocation2 + $0x140] sm:$0xff]  ;;  %108 = vst [vmem:[#allocation1] ss:$4 sm:$0xff] %v36_v46  ;;  %v44_v49 = vld [vmem:[#allocation2 + $0x38] sm:$0xff] }
  0x16   :  { %140 = vmatpush.msra.mxu1 %v85_v31  ;;  %161 = vmatpush.msra.mxu2 %v52_v32  ;;  %v43_v50 = vld [vmem:[#allocation2 + $0x30] sm:$0xff]  ;;  %v76_v51 = vld [vmem:[#allocation2 + $0x138] sm:$0xff]  ;;  %v42_v53 = vld [vmem:[#allocation2 + $0x28] sm:$0xff] }
  0x17   :  { %121 = vmatpush.msra.mxu0 %v51_v33  ;;  %181 = vmatpush.msra.mxu3 %v84_v34  ;;  %v75_v52 = vld [vmem:[#allocation2 + $0x130] sm:$0xff]  ;;  %v41_v54 = vld [vmem:[#allocation2 + $0x20] sm:$0xff]  ;;  %v74_v55 = vld [vmem:[#allocation2 + $0x128] sm:$0xff] }
  0x18   :  { %141 = vmatpush.msra.mxu1 %v83_v35  ;;  %162 = vmatpush.msra.mxu2 %v50_v36  ;;  %v73_v56 = vld [vmem:[#allocation2 + $0x120] sm:$0xff]  ;;  %v40_v57 = vld [vmem:[#allocation2 + $0x18] sm:$0xff]  ;;  %v39_v58 = vld [vmem:[#allocation2 + $0x10] sm:$0xff] }
  0x19   :  { %122 = vmatpush.msra.mxu0 %v49_v37  ;;  %182 = vmatpush.msra.mxu3 %v82_v38  ;;  %v72_v59 = vld [vmem:[#allocation2 + $0x118] sm:$0xff]  ;;  %v71_v60 = vld [vmem:[#allocation2 + $0x110] sm:$0xff]  ;;  %v38_v61 = vld [vmem:[#allocation2 + $0x8] sm:$0xff] }
  0x1a   :  { %142 = vmatpush.msra.mxu1 %v81_v39  ;;  %163 = vmatpush.msra.mxu2 %v48_v40  ;;  %v37_v62 = vld [vmem:[#allocation2] sm:$0xff]  ;;  %v70_v0 = vld [vmem:[#allocation2 + $0x108] sm:$0xff]  ;;  %v214_v3 = vld [vmem:[#allocation2 + $0x2f0] sm:$0xff] }
  0x1b   :  { %123 = vmatpush.msra.mxu0 %v47_v41  ;;  %183 = vmatpush.msra.mxu3 %v80_v42  ;;  %v69_v2 = vld [vmem:[#allocation2 + $0x100] sm:$0xff]  ;;  %v230_v5 = vld [vmem:[#allocation2 + $0x3f0] sm:$0xff] }
  0x1c   :  { %143 = vmatpush.msra.mxu1 %v79_v43  ;;  %164 = vmatpush.msra.mxu2 %v46_v44  ;;  %v109_v63 = vld.sshfl [vmem:[#allocation1] sm:$0xff pattern:$0x73625140]  ;;  %v110_v1 = vld.sshfl [vmem:[#allocation1 + $0x8] sm:$0xff pattern:$0x73625140] }
  0x1d   :  { %124 = vmatpush.msra.mxu0 %v45_v45  ;;  %184 = vmatpush.msra.mxu3 %v78_v47  ;;  %v213_v4 = vld [vmem:[#allocation2 + $0x2e0] sm:$0xff]  ;;  %v212_v6 = vld [vmem:[#allocation2 + $0x2d0] sm:$0xff] }
  0x1e   :  { %144 = vmatpush.msra.mxu1 %v77_v48  ;;  %165 = vmatpush.msra.mxu2 %v44_v49  ;;  %v229_v7 = vld [vmem:[#allocation2 + $0x3e0] sm:$0xff]  ;;  %v228_v9 = vld [vmem:[#allocation2 + $0x3d0] sm:$0xff] }
  0x1f   :  { %125 = vmatpush.msra.mxu0 %v43_v50  ;;  %185 = vmatpush.msra.mxu3 %v76_v51  ;;  %v211_v8 = vld [vmem:[#allocation2 + $0x2c0] sm:$0xff]  ;;  %v210_v10 = vld [vmem:[#allocation2 + $0x2b0] sm:$0xff] }
  0x20   :  { %145 = vmatpush.msra.mxu1 %v75_v52  ;;  %166 = vmatpush.msra.mxu2 %v42_v53  ;;  %v227_v11 = vld [vmem:[#allocation2 + $0x3c0] sm:$0xff]  ;;  %v226_v13 = vld [vmem:[#allocation2 + $0x3b0] sm:$0xff] }
  0x21   :  { %126 = vmatpush.msra.mxu0 %v41_v54  ;;  %186 = vmatpush.msra.mxu3 %v74_v55  ;;  %v209_v12 = vld [vmem:[#allocation2 + $0x2a0] sm:$0xff]  ;;  %v208_v14 = vld [vmem:[#allocation2 + $0x290] sm:$0xff] }
  0x22   :  { %146 = vmatpush.msra.mxu1 %v73_v56  ;;  %167 = vmatpush.msra.mxu2 %v40_v57  ;;  %v225_v15 = vld [vmem:[#allocation2 + $0x3a0] sm:$0xff]  ;;  %v224_v17 = vld [vmem:[#allocation2 + $0x390] sm:$0xff] }
  0x23   :  { %127 = vmatpush.msra.mxu0 %v39_v58  ;;  %187 = vmatpush.msra.mxu3 %v72_v59  ;;  %v207_v16 = vld [vmem:[#allocation2 + $0x280] sm:$0xff]  ;;  %v206_v18 = vld [vmem:[#allocation2 + $0x270] sm:$0xff] }
  0x24   :  { %147 = vmatpush.msra.mxu1 %v71_v60  ;;  %168 = vmatpush.msra.mxu2 %v38_v61  ;;  %v223_v19 = vld [vmem:[#allocation2 + $0x380] sm:$0xff]  ;;  %v222_v21 = vld [vmem:[#allocation2 + $0x370] sm:$0xff] }
  0x25   :  { %128 = vmatpush.msra.mxu0 %v37_v62  ;;  %169 = vmatmul.f32.vlgmr.msra.gmra.mxu2 %v109_v63  ;;  %v205_v20 = vld [vmem:[#allocation2 + $0x260] sm:$0xff]  ;;  %v204_v22 = vld [vmem:[#allocation2 + $0x250] sm:$0xff] }
  0x26   :  { %188 = vmatpush.msra.mxu3 %v70_v0  ;;  %129 = vmatmul.f32.vlgmr.msra.gmra.mxu0 %v109_v63  ;;  %v221_v23 = vld [vmem:[#allocation2 + $0x360] sm:$0xff]  ;;  %v202_v25 = vld [vmem:[#allocation2 + $0x230] sm:$0xff] }
  0x27   :  { %189 = vmatmul.f32.vlgmr.msra.gmra.mxu3 %v110_v1  ;;  %148 = vmatpush.msra.mxu1 %v69_v2  ;;  %v203_v24 = vld [vmem:[#allocation2 + $0x240] sm:$0xff]  ;;  %v220_v26 = vld [vmem:[#allocation2 + $0x350] sm:$0xff] }
  0x28   :  { %232 = vmatpush.msrb.mxu0 %v214_v3  ;;  %149 = vmatmul.f32.vlgmr.msra.gmra.mxu1 %v110_v1  ;;  %v201_v27 = vld [vmem:[#allocation2 + $0x220] sm:$0xff]  ;;  %v200_v29 = vld [vmem:[#allocation2 + $0x210] sm:$0xff]  ;;  %v231_v3 = vld [vmem:[%s598_s4 + $0x1] ss:$0 sm:$0xff] }
  0x29   :  { %252 = vmatpush.msrb.mxu1 %v230_v5  ;;  %v219_v28 = vld [vmem:[#allocation2 + $0x340] sm:$0xff]  ;;  %v218_v30 = vld [vmem:[#allocation2 + $0x330] sm:$0xff] }
  0x2a   :  { %233 = vmatpush.msrb.mxu0 %v213_v4  ;;  %v199_v31 = vld [vmem:[#allocation2 + $0x200] sm:$0xff]  ;;  %v216_v33 = vld [vmem:[#allocation2 + $0x310] sm:$0xff] }
  0x2b   :  { %253 = vmatpush.msrb.mxu1 %v229_v7  ;;  %v217_v32 = vld [vmem:[#allocation2 + $0x320] sm:$0xff]  ;;  %v290_v35 = vld [vmem:[#allocation2 + $0x4f0] sm:$0xff] }
  0x2c   :  { %234 = vmatpush.msrb.mxu0 %v212_v6  ;;  %v215_v34 = vld [vmem:[#allocation2 + $0x300] sm:$0xff]  ;;  %292 = vmatpush.msrb.mxu2 %v290_v35  ;;  %v288_v37 = vld [vmem:[#allocation2 + $0x4d0] sm:$0xff] }
  0x2d   :  { %254 = vmatpush.msrb.mxu1 %v228_v9  ;;  %v289_v36 = vld [vmem:[#allocation2 + $0x4e0] sm:$0xff]  ;;  %v286_v39 = vld [vmem:[#allocation2 + $0x4b0] sm:$0xff] }
  0x2e   :  { %235 = vmatpush.msrb.mxu0 %v211_v8  ;;  %293 = vmatpush.msrb.mxu2 %v289_v36  ;;  %v287_v38 = vld [vmem:[#allocation2 + $0x4c0] sm:$0xff]  ;;  %v284_v41 = vld [vmem:[#allocation2 + $0x490] sm:$0xff]  ;;  %v435_v36 = vld [vmem:[%s598_s4 + $0x5] ss:$0 sm:$0xff] }
  0x2f   :  { %255 = vmatpush.msrb.mxu1 %v227_v11  ;;  %v285_v40 = vld [vmem:[#allocation2 + $0x4a0] sm:$0xff]  ;;  %v282_v44 = vld [vmem:[#allocation2 + $0x470] sm:$0xff] }
  0x30   :  { %236 = vmatpush.msrb.mxu0 %v210_v10  ;;  %294 = vmatpush.msrb.mxu2 %v288_v37  ;;  %v283_v42 = vld [vmem:[#allocation2 + $0x480] sm:$0xff]  ;;  %v280_v47 = vld [vmem:[#allocation2 + $0x450] sm:$0xff] }
  0x31   :  { %256 = vmatpush.msrb.mxu1 %v226_v13  ;;  %v101_v43 = vld [vmem:[%s598_s4] ss:$8 sm:$0x3]  ;;  %v278_v62 = vld [vmem:[#allocation2 + $0x430] sm:$0xff] }
  0x32   :  { %237 = vmatpush.msrb.mxu0 %v209_v12  ;;  %295 = vmatpush.msrb.mxu2 %v287_v38  ;;  %v103_v45 = vperm.slane %v101_v43, 0  ;;  %v281_v46 = vld [vmem:[#allocation2 + $0x460] sm:$0xff]  ;;  %v104_v51 = vperm.slane %v101_v43, 1  ;;  %v276_v0 = vld [vmem:[#allocation2 + $0x410] sm:$0xff] }
  0x33   :  { %257 = vmatpush.msrb.mxu1 %v225_v15  ;;  %v279_v61 = vld [vmem:[#allocation2 + $0x440] sm:$0xff]  ;;  %v318_v2 = vld [vmem:[#allocation2 + $0x530] sm:$0xff] }
  0x34   :  { %238 = vmatpush.msrb.mxu0 %v208_v14  ;;  %296 = vmatpush.msrb.mxu2 %v286_v39  ;;  %v277_v63 = vld [vmem:[#allocation2 + $0x420] sm:$0xff]  ;;  %v316_v11 = vld [vmem:[#allocation2 + $0x510] sm:$0xff]  ;;  %v291_v14 = vld [vmem:[%s598_s4 + $0x2] ss:$0 sm:$0xff] }
  0x35   :  { %258 = vmatpush.msrb.mxu1 %v224_v17  ;;  %v275_v1 = vld [vmem:[#allocation2 + $0x400] sm:$0xff]  ;;  %336 = vmatpush.msrb.mxu3 %v318_v2  ;;  %v348_v13 = vld [vmem:[#allocation2 + $0x550] sm:$0xff] }
  0x36   :  { %239 = vmatpush.msrb.mxu0 %v207_v16  ;;  %297 = vmatpush.msrb.mxu2 %v285_v40  ;;  %v317_v10 = vld [vmem:[#allocation2 + $0x520] sm:$0xff] }
  0x37   :  { %259 = vmatpush.msrb.mxu1 %v223_v19  ;;  %337 = vmatpush.msrb.mxu3 %v317_v10  ;;  %v315_v12 = vld [vmem:[#allocation2 + $0x500] sm:$0xff] }
  0x38   :  { %240 = vmatpush.msrb.mxu0 %v206_v18  ;;  %298 = vmatpush.msrb.mxu2 %v284_v41  ;;  %v347_v19 = vld [vmem:[#allocation2 + $0x540] sm:$0xff]  ;;  %v349_v41 = vld [vmem:[%s598_s4 + $0x4] ss:$0 sm:$0xff] }
  0x39   :  { %260 = vmatpush.msrb.mxu1 %v222_v21  ;;  %338 = vmatpush.msrb.mxu3 %v316_v11  ;;  %v319_v21 = vld [vmem:[%s598_s4 + $0x3] ss:$0 sm:$0xff] }
  0x3a   :  { %241 = vmatpush.msrb.mxu0 %v205_v20  ;;  %299 = vmatpush.msrb.mxu2 %v283_v42  ;;  %v380_v20 = vld [vmem:[#allocation2 + $0x570] sm:$0xf] }
  0x3b   :  { %261 = vmatpush.msrb.mxu1 %v221_v23  ;;  %339 = vmatpush.msrb.mxu3 %v315_v12 }
  0x3c   :  { %242 = vmatpush.msrb.mxu0 %v204_v22  ;;  %300 = vmatpush.msrb.mxu2 %v282_v44  ;;  %v444_v44 = vld [vmem:[%s598_s4 + $0x6] ss:$0 sm:$0xff] }
  0x3d   :  { %262 = vmatpush.msrb.mxu1 %v220_v26  ;;  %368 = vmatpush.msra.mxu3 %v348_v13 }
  0x3e   :  { %243 = vmatpush.msrb.mxu0 %v203_v24  ;;  %301 = vmatpush.msrb.mxu2 %v281_v46 }
  0x3f   :  { %263 = vmatpush.msrb.mxu1 %v219_v28  ;;  %369 = vmatpush.msra.mxu3 %v347_v19  ;;  %v377_v28 = vld [vmem:[%s595_s1] sm:$0x3] }
  0x40   :  { %244 = vmatpush.msrb.mxu0 %v202_v25  ;;  %302 = vmatpush.msrb.mxu2 %v280_v47  ;;  %v378_v25 = vld [vmem:[#allocation2 + $0x560] sm:$0xf] }
  0x41   :  { %264 = vmatpush.msrb.mxu1 %v218_v30  ;;  %v442_v30 = vld [vmem:[#allocation2 + $0x5a0] sm:$0xff] }
  0x42   :  { %245 = vmatpush.msrb.mxu0 %v201_v27  ;;  %303 = vmatpush.msrb.mxu2 %v279_v61  ;;  %v379_v27 = vld [vmem:[%s596_s2] sm:$0x3] }
  0x43   :  { %265 = vmatpush.msrb.mxu1 %v217_v32  ;;  %v440_v32 = vld [vmem:[#allocation2 + $0x580] sm:$0xff] }
  0x44   :  { %246 = vmatpush.msrb.mxu0 %v200_v29  ;;  %304 = vmatpush.msrb.mxu2 %v278_v62  ;;  %v443_v29 = vld [vmem:[#allocation2 + $0x5b0] sm:$0xff] }
  0x45   :  { %266 = vmatpush.msrb.mxu1 %v216_v33 }
  0x46   :  { %247 = vmatpush.msrb.mxu0 %v199_v31  ;;  %305 = vmatpush.msrb.mxu2 %v277_v63  ;;  %v441_v31 = vld [vmem:[#allocation2 + $0x590] sm:$0xff] }
  0x47   :  { %267 = vmatpush.msrb.mxu1 %v215_v34 }
  0x48   :  { %306 = vmatpush.msrb.mxu2 %v276_v0  ;;  %460 = vmatpush.msra.mxu0 %v443_v29 }
  0x4a   :  { %307 = vmatpush.msrb.mxu2 %v275_v1  ;;  %461 = vmatpush.msra.mxu0 %v442_v30 }
  0x4c   :  { %462 = vmatpush.msra.mxu0 %v441_v31 }
  0x4e   :  { %463 = vmatpush.msra.mxu0 %v440_v32 }
  0xa3   :  { %v130_v48 = vpop.f32.mrf.mxu0 }
  0xa4   :  { %v131_v49 = vadd.f32 %v130_v48, %v103_v45  ;;  %v468_v48 = vld [vmem:[#allocation2 + $0x5c0] ss:$0 sm:$0xff] }
  0xa5   :  { %v150_v50 = vpop.f32.mrf.mxu1 }
  0xa6   :  { %v151_v52 = vadd.f32 %v150_v50, %v131_v49 }
  0xa8   :  { %v195_v53 = vmul.f32 0.01, %v151_v52  ;;  %v170_v54 = vpop.f32.mrf.mxu2  ;;  %vm193_vm0 = vcmp.ge.f32.partialorder %v151_v52, 0.0 }
  0xa9   :  { %v171_v55 = vadd.f32 %v170_v54, %v104_v51 }
  0xaa   :  { %v190_v56 = vpop.f32.mrf.mxu3  ;;  %v197_v57 = vsel %vm193_vm0, %v151_v52, %v195_v53  ;;  %v475_v52 = vld [vmem:[%s598_s4 + $0x7] ss:$0 sm:$0xff] }
  0xab   :  { %v191_v58 = vadd.f32 %v190_v56, %v171_v55  ;;  %248 = vmatmul.f32.vlgmr.msrb.gmra.mxu0 %v197_v57 }
  0xad   :  { %v196_v59 = vmul.f32 0.01, %v191_v58  ;;  %vm194_vm1 = vcmp.ge.f32.partialorder %v191_v58, 0.0 }
  0xaf   :  { %v198_v60 = vsel %vm194_vm1, %v191_v58, %v196_v59 }
  0xb0   :  { %268 = vmatmul.f32.vlgmr.msrb.gmra.mxu1 %v198_v60 }
 0x128   :  { %v249_v4 = vpop.f32.mrf.mxu0 }
 0x129   :  { %v250_v5 = vadd.f32 %v249_v4, %v231_v3 }
 0x12d   :  { %v269_v6 = vpop.f32.mrf.mxu1 }
 0x12e   :  { %v270_v7 = vadd.f32 %v269_v6, %v250_v5 }
 0x130   :  { %v273_v8 = vmul.f32 0.01, %v270_v7  ;;  %vm272_vm2 = vcmp.ge.f32.partialorder %v270_v7, 0.0 }
 0x132   :  { %v274_v9 = vsel %vm272_vm2, %v270_v7, %v273_v8 }
 0x133   :  { %308 = vmatmul.f32.vlgmr.msrb.gmra.mxu2 %v274_v9 }
 0x1b6   :  { %v309_v15 = vpop.f32.mrf.mxu2 }
 0x1b7   :  { %v310_v16 = vadd.f32 %v309_v15, %v291_v14 }
 0x1b9   :  { %vm312_vm3 = vcmp.ge.f32.partialorder %v310_v16, 0.0  ;;  %v313_v17 = vmul.f32 0.01, %v310_v16 }
 0x1bb   :  { %v314_v18 = vsel %vm312_vm3, %v310_v16, %v313_v17 }
 0x1bc   :  { %484 = vmatmul.msk.f32.vlgmr.msrb.gmra.mxu3 %vm320_vm4, %v314_v18 }
 0x1bd   :  { %486 = vmatpush.msk.msrb.mxu3 %vm385_vm5, %v380_v20 }
 0x23f   :  { %v341_v22 = vpop.f32.mrf.mxu3 }
 0x240   :  { %v342_v23 = vadd.f32 %v341_v22, %v319_v21 }
 0x242   :  { %vm344_vm6 = vcmp.ge.f32.partialorder %v342_v23, 0.0  ;;  %v345_v24 = vmul.f32 0.01, %v342_v23 }
 0x244   :  { %v346_v26 = vsel %vm344_vm6, %v342_v23, %v345_v24 }
 0x245   :  { %485 = vmatmul.msk.f32.vlgmr.msra.gmra.mxu3 %vm350_vm7, %v346_v26 }
 0x246   :  { %488 = vmatpush.msk.msra.mxu3 %vm385_vm5, %v378_v25 }
 0x24d   :  { %487 = vmatmul.msk.f32.vlgmr.msrb.gmra.mxu3 %vm381_vm8, %v379_v27 }
 0x255   :  { %489 = vmatmul.msk.f32.vlgmr.msra.gmra.mxu3 %vm381_vm8, %v377_v28 }
 0x2c8   :  { %v371_v33 = vpop.f32.mrf.mxu3 }
 0x2c9   :  { %v372_v42 = vadd.f32 %v371_v33, %v349_v41 }
 0x2cb   :  { %v375_v43 = vmul.f32 0.01, %v372_v42  ;;  %vm374_vm10 = vcmp.ge.f32.partialorder %v372_v42, 0.0 }
 0x2cd   :  { %v376_v47 = vsel %vm374_vm10, %v372_v42, %v375_v43 }
 0x2d0   :  { %v406_v34 = vpop.f32.mrf.mxu3 }
 0x2d8   :  { %v432_v35 = vpop.f32.mrf.mxu3 }
 0x2d9   :  { %v433_v37 = vadd.f32 %v432_v35, %v406_v34 }
 0x2db   :  { %v436_v38 = vadd.f32 %v435_v36, %v433_v37 }
 0x2dd   :  { %vm437_vm9 = vcmp.ge.f32.partialorder %v436_v38, 0.0  ;;  %v438_v39 = vmul.f32 0.01, %v436_v38 }
 0x2df   :  { %v439_v40 = vsel %vm437_vm9, %v436_v38, %v438_v39 }
 0x2e0   :  { %490 = vmatmul.msk.f32.vlgmr.msra.gmra.mxu0 %vm320_vm4, %v439_v40 }
 0x35d   :  { %v465_v45 = vpop.f32.mrf.mxu0 }
 0x35e   :  { %v466_v46 = vadd.f32 %v465_v45, %v444_v44 }
 0x360   :  { %v469_v49 = vmul.f32 %v466_v46, %v376_v47 }
 0x362   :  { %v470_v50 = vmul.f32 %v469_v49, %v468_v48 }
 0x364   :  { %v472_v51 = vsel %vm471_vm11, %v470_v50, 0.0 }
 0x365   :  { %473 = vadd.xlane.f32.xlu0 %v472_v51 }
 0x3d8   :  { %v474_v53 = vpop.xlane.xlu0 %473 }
 0x3d9   :  { %v476_v54 = vadd.f32 %v475_v52, %v474_v53 }
 0x3db   :  { %478 = vst.msk [vmem:[%s599_s5] sm:$0x3] %vm477_vm12, %v476_v54 }
 0x3dc   :  { %483 = vsyncpa [#allocation3], 1 }

</bundles_post_ra>
